<compile_context>
chip_gen: v7x
topology: tpu7x:2x2x1
jax: 0.10.0
libtpu: 0.0.40
codegen_flags: <defaults>
</compile_context>

<pallas_src>
import functools

import jax
import jax.numpy as jnp
from jax.experimental import pallas as pl
from jax.experimental.pallas import tpu as pltpu


def _graph_agg_kernel(x_ref, w_ref, b_ref, o_ref, *, n_nodes, o_pad, apply_tanh):
    # x_ref: (TB, N, F); w_ref: (F, 2*Op) fused [sig | tanh]; b_ref: (1, 2*Op);
    # o_ref: (TB, Op) lane-dense output block.
    tb = x_ref.shape[0]
    f = x_ref.shape[2]

    # Single fused matmul over all TB*N node rows of this block.
    x2d = x_ref[...].reshape(tb * n_nodes, f)                      # (TB*N, F)
    logits = jnp.dot(x2d, w_ref[...], preferred_element_type=jnp.float32)
    logits = logits + b_ref[...].astype(jnp.float32)               # (TB*N, 2*Op)
    logits = logits.reshape(tb, n_nodes, 2 * o_pad)

    i = jax.nn.sigmoid(logits[..., :o_pad])                        # (TB, N, Op)
    j = jnp.tanh(logits[..., o_pad:])                              # (TB, N, Op)

    # Reduce over the node axis (N small here; for large N prefer a ones-matmul).
    out = jnp.sum(i * j, axis=1)                                   # (TB, Op)

    if apply_tanh:
        out = jnp.tanh(out)

    # TODO(synk): dropout is identity in eval mode; training-mode stateful PRNG
    # masking intentionally omitted.
    o_ref[...] = out.astype(o_ref.dtype)


def graph_aggregation(x, w_sig, b_sig, w_tanh, b_tanh, *, apply_tanh=True,
                      use_bf16_matmul=False, batch_block=None):
    """x: (B, N, F) float32; w_*: (F, O); b_*: (O,). Returns (B, O) float32."""
    B, N, F = x.shape
    O = w_sig.shape[1]

    # ---- fuse the two linear branches; pad out_features to a lane-dense width ----
    Op = max(128, ((O + 127) // 128) * 128)

    def _pad_cols(w, b):
        w_p = jnp.zeros((F, Op), w.dtype).at[:, :O].set(w)
        b_p = jnp.zeros((1, Op), b.dtype).at[0, :O].set(b)   # zero-padded bias =>
        return w_p, b_p                                       # padded tanh cols give 0

    w_s, b_s = _pad_cols(w_sig, b_sig)
    w_t, b_t = _pad_cols(w_tanh, b_tanh)
    w_cat = jnp.concatenate([w_s, w_t], axis=1)               # (F, 2*Op)
    b_cat = jnp.concatenate([b_s, b_t], axis=1)               # (1, 2*Op)

    if use_bf16_matmul:
        # v6e/v7x: bf16 MXU inputs, f32 accumulation; halves x/weight DMA bytes.
        x = x.astype(jnp.bfloat16)
        w_cat = w_cat.astype(jnp.bfloat16)

    # ---- choose batch tile TB: whole problem in one step when small, else
    #      multiple-of-8 tiles sized well under VMEM (v7x has only 64 MiB). ----
    if batch_block is None:
        x_bytes = x.dtype.itemsize
        per_tb = 2 * (N * F * x_bytes + Op * 4)               # dbl-buffered x + out blocks
        tb_max = max(8, min(512, ((8 * 1024 * 1024) // per_tb) // 8 * 8))
        TB = B if B <= tb_max else tb_max
    else:
        TB = batch_block
    B_pad = pl.cdiv(B, TB) * TB
    if B_pad != B:
        x = jnp.pad(x, ((0, B_pad - B), (0, 0), (0, 0)))

    grid = (B_pad // TB,)

    cost = pl.CostEstimate(
        flops=2 * B_pad * N * F * (2 * Op),
        transcendentals=B_pad * N * (2 * Op) + B_pad * Op,
        bytes_accessed=(x.size * x.dtype.itemsize
                        + w_cat.size * w_cat.dtype.itemsize
                        + b_cat.size * b_cat.dtype.itemsize
                        + B_pad * Op * 4),
    )

    kernel = functools.partial(
        _graph_agg_kernel, n_nodes=N, o_pad=Op, apply_tanh=apply_tanh)

    out = pl.pallas_call(
        kernel,
        out_shape=jax.ShapeDtypeStruct((B_pad, Op), jnp.float32),
        grid_spec=pltpu.PrefetchScalarGridSpec(
            num_scalar_prefetch=0,
            grid=grid,
            in_specs=[
                pl.BlockSpec((TB, N, F), lambda b: (b, 0, 0)),     # per-step x block
                pl.BlockSpec((F, 2 * Op), lambda b: (0, 0)),        # fused weight (resident)
                pl.BlockSpec((1, 2 * Op), lambda b: (0, 0)),        # fused bias (resident)
            ],
            out_specs=pl.BlockSpec((TB, Op), lambda b: (b, 0)),     # lane-dense store
        ),
        compiler_params=pltpu.CompilerParams(dimension_semantics=("parallel",)),
        cost_estimate=cost,
    )(x, w_cat, b_cat)

    return out[:B, :O]


def _reference(x, w_sig, b_sig, w_tanh, b_tanh, apply_tanh=True):
    i = jax.nn.sigmoid(jnp.einsum("bnf,fo->bno", x, w_sig) + b_sig)
    j = jnp.tanh(jnp.einsum("bnf,fo->bno", x, w_tanh) + b_tanh)
    out = jnp.sum(i * j, axis=1)
    if apply_tanh:
        out = jnp.tanh(out)
    return out


if __name__ == "__main__":
    # Shapes implied by the module: feature dim = in_features + b_dim, N graph nodes.
    B = 2          # batch
    N = 8          # number of graph nodes (reduction axis)
    in_features = 24
    b_dim = 8
    F = in_features + b_dim   # 32
    O = 32         # out_features

    key = jax.random.PRNGKey(0)
    kx, kws, kbs, kwt, kbt = jax.random.split(key, 5)

    x = jax.random.normal(kx, (B, N, F), dtype=jnp.float32)
    # Deterministic "init" of the two Linear layers (weights stored as (F, O)).
    w_sig = jax.random.normal(kws, (F, O), dtype=jnp.float32) * 0.1
    b_sig = jax.random.normal(kbs, (O,), dtype=jnp.float32) * 0.1
    w_tanh = jax.random.normal(kwt, (F, O), dtype=jnp.float32) * 0.1
    b_tanh = jax.random.normal(kbt, (O,), dtype=jnp.float32) * 0.1

    ref = _reference(x, w_sig, b_sig, w_tanh, b_tanh, apply_tanh=True)

    # f32 path (exact PyTorch semantics).
    out = graph_aggregation(x, w_sig, b_sig, w_tanh, b_tanh, apply_tanh=True)
    out = jax.block_until_ready(out)
    assert out.shape == (B, O)
    assert jnp.allclose(out, ref, atol=1e-5, rtol=1e-5), "f32 mismatch vs reference"

    # bf16 matmul-input path (v6e/v7x MXU friendly) — looser tolerance.
    out_bf16 = graph_aggregation(x, w_sig, b_sig, w_tanh, b_tanh,
                                 apply_tanh=True, use_bf16_matmul=True)
    out_bf16 = jax.block_until_ready(out_bf16)
    assert jnp.allclose(out_bf16, ref, atol=3e-2, rtol=3e-2), "bf16 mismatch vs reference"

    print("KERNEL_OK")
</pallas_src>

<mosaic_0001>
module attributes {stable_mosaic.version = 11 : i64} {
  func.func @_graph_agg_kernel(%arg0: i32, %arg1: memref<2x8x32xf32, #tpu.memory_space<vmem>>, %arg2: memref<32x256xf32, #tpu.memory_space<vmem>>, %arg3: memref<1x256xf32, #tpu.memory_space<vmem>>, %arg4: memref<2x128xf32, #tpu.memory_space<vmem>>) attributes {dimension_semantics = [#tpu.dimension_semantics<parallel>], iteration_bounds = array<i64: 1>, scalar_prefetch = 0 : i64, scratch_operands = 0 : i64, tpu.core_type = #tpu.core_type<tc>, window_params = [{transform_indices = @transform_0, window_bounds = array<i64: 2, 8, 32>}, {pipeline_mode = #tpu.pipeline_mode<synchronous>, transform_indices = @transform_1, window_bounds = array<i64: 32, 256>}, {pipeline_mode = #tpu.pipeline_mode<synchronous>, transform_indices = @transform_2, window_bounds = array<i64: 1, 256>}, {transform_indices = @transform_3, window_bounds = array<i64: 2, 128>}]} {
    %c0 = arith.constant 0 : index
    %c0_0 = arith.constant 0 : index
    %c0_1 = arith.constant 0 : index
    %0 = vector.load %arg1[%c0, %c0_0, %c0_1] : memref<2x8x32xf32, #tpu.memory_space<vmem>>, vector<2x8x32xf32>
    %1 = vector.shape_cast %0 : vector<2x8x32xf32> to vector<16x32xf32>
    %c0_2 = arith.constant 0 : index
    %c0_3 = arith.constant 0 : index
    %2 = vector.load %arg2[%c0_2, %c0_3] : memref<32x256xf32, #tpu.memory_space<vmem>>, vector<32x256xf32>
    %cst = arith.constant dense<0.000000e+00> : vector<16x256xf32>
    %3 = tpu.matmul %1, %2, %cst {dimension_numbers = #tpu.dot_dimension_numbers<[1], [0], [0], [1], [0, 0, 1, 1], [], []>} : vector<16x32xf32>, vector<32x256xf32>, vector<16x256xf32> -> vector<16x256xf32>
    %c0_4 = arith.constant 0 : index
    %c0_5 = arith.constant 0 : index
    %4 = vector.load %arg3[%c0_4, %c0_5] : memref<1x256xf32, #tpu.memory_space<vmem>>, vector<1x256xf32>
    %5 = vector.broadcast %4 : vector<1x256xf32> to vector<16x256xf32>
    %6 = arith.addf %3, %5 : vector<16x256xf32>
    %7 = vector.shape_cast %6 : vector<16x256xf32> to vector<2x8x256xf32>
    %8 = vector.extract_strided_slice %7 {offsets = [0, 0, 0], sizes = [2, 8, 128], strides = [1, 1, 1]} : vector<2x8x256xf32> to vector<2x8x128xf32>
    %9 = arith.negf %8 : vector<2x8x128xf32>
    %10 = math.exp %9 : vector<2x8x128xf32>
    %cst_6 = arith.constant 1.000000e+00 : f32
    %11 = vector.broadcast %cst_6 : f32 to vector<2x8x128xf32>
    %12 = arith.addf %11, %10 : vector<2x8x128xf32>
    %13 = arith.divf %11, %12 : vector<2x8x128xf32>
    %14 = vector.extract_strided_slice %7 {offsets = [0, 0, 128], sizes = [2, 8, 128], strides = [1, 1, 1]} : vector<2x8x256xf32> to vector<2x8x128xf32>
    %15 = math.tanh %14 : vector<2x8x128xf32>
    %16 = arith.mulf %13, %15 : vector<2x8x128xf32>
    %cst_7 = arith.constant dense<0.000000e+00> : vector<2x128xf32>
    %17 = vector.multi_reduction <add>, %16, %cst_7 [1] : vector<2x8x128xf32> to vector<2x128xf32>
    %18 = math.tanh %17 : vector<2x128xf32>
    %c0_8 = arith.constant 0 : index
    %c0_9 = arith.constant 0 : index
    %19 = vector.load %arg4[%c0_8, %c0_9] : memref<2x128xf32, #tpu.memory_space<vmem>>, vector<2x128xf32>
    tpu.vector_store %arg4[%c0_8, %c0_9], %18 {strides = array<i32>} : memref<2x128xf32, #tpu.memory_space<vmem>>, vector<2x128xf32>,
    return
  }
  func.func @transform_0(%arg0: i32) -> (i32, i32, i32) {
    %c0_i32 = arith.constant 0 : i32
    %c0_i32_0 = arith.constant 0 : i32
    %c0_i32_1 = arith.constant 0 : i32
    return %arg0, %c0_i32, %c0_i32_0 : i32, i32, i32
  }
  func.func @transform_1(%arg0: i32) -> (i32, i32) {
    %c0_i32 = arith.constant 0 : i32
    %c0_i32_0 = arith.constant 0 : i32
    %c0_i32_1 = arith.constant 0 : i32
    return %c0_i32, %c0_i32_0 : i32, i32
  }
  func.func @transform_2(%arg0: i32) -> (i32, i32) {
    %c0_i32 = arith.constant 0 : i32
    %c0_i32_0 = arith.constant 0 : i32
    %c0_i32_1 = arith.constant 0 : i32
    return %c0_i32, %c0_i32_0 : i32, i32
  }
  func.func @transform_3(%arg0: i32) -> (i32, i32) {
    %c0_i32 = arith.constant 0 : i32
    %c0_i32_0 = arith.constant 0 : i32
    return %arg0, %c0_i32 : i32, i32
  }
}

</mosaic_0001>

<bundles_post_ra>
// kernel: tpu_custom_call.1
= control target key start
LH: loop header
LB: loop body
LE: loop exit
PB: predicated region body
PF: predicated region fallthrough
CT: control target
= control target key end

     0   :  { %8 = vsyncpa [#allocation3], 0  ;;  %s380_s0 = inlined_call_operand.hbm [shape: f32[2,8,32], index: 0, kind: input, shape index: {}]   ;;  %s381_s1 = inlined_call_operand.hbm [shape: f32[32,256], index: 1, kind: input, shape index: {}]   ;;  %s382_s2 = inlined_call_operand.vmem [shape: f32[1,256], index: 2, kind: input, shape index: {}]   ;;  %s383_s3 = inlined_call_operand.hbm [shape: f32[2,128], index: 3, kind: output, shape index: {}]  }
   0x1   :  { %9 = vsyncpa [#allocation6], 0 }
   0x2   :  { %10 = vsyncpa [#allocation4], 0  ;;  %s313_s12 = smov [#allocation2]   ;;  %s241_s16 = scalar_lea.hbm %s380_s0, 256 }
   0x3   :  { %s16_s13 = sshll.u32 %s313_s12, 4  ;;  %p242_p0 = scmp.ne.s32.totalorder %s380_s0, %s241_s16  ;;  %s17_s13 = int_to_ptr.vmem [resolvable:$true] %s16_s13 }
   0x4   :  { %p245_p1 = scmp.lt.u32.totalorder %s241_s16, %s380_s0 }
   0x6   :  { %p247_p2 = pnand %p245_p1, %p242_p0 }
   0x8   :  { %250 = shalt.err (!%p247_p2)
}
   0x9   :  { %s251_s21 = scalar_lea.vmem %s17_s13, 256  ;;  %p256_p4 = scmp.lt.s32.totalorder %s17_s13, %s17_s13 }
   0xa   :  { %p252_p3 = scmp.ne.s32.totalorder %s17_s13, %s251_s21  ;;  %p257_p5 = scmp.lt.s32.totalorder %s251_s21, %s251_s21 }
   0xc   :  { %p258_p6 = por %p257_p5, %p256_p4 }
   0xe   :  { %p259_p7 = pnand %p258_p6, %p252_p3 }
  0x10   :  { %262 = shalt.err (!%p259_p7)
}
  0x11   :  { %s314_s22 = smov 128   ;;  %s315_s23 = smov 8  }
  0x12   :  { %22 = dma.hbm_to_vmem [thread:$0]  %s380_s0, 256, %s17_s13, [#allocation3], %s314_s22, %s314_s22, %s315_s23  }
  0x13   :  { %s316_s26 = smov [#allocation5]   ;;  %s263_s30 = scalar_lea.hbm %s381_s1, 1024 }
  0x14   :  { %s28_s27 = sshll.u32 %s316_s26, 4  ;;  %p264_p8 = scmp.ne.s32.totalorder %s381_s1, %s263_s30  ;;  %s29_s27 = int_to_ptr.vmem [resolvable:$true] %s28_s27 }
  0x15   :  { %p267_p9 = scmp.lt.u32.totalorder %s263_s30, %s381_s1 }
  0x17   :  { %p269_p10 = pnand %p267_p9, %p264_p8 }
  0x19   :  { %272 = shalt.err (!%p269_p10)
}
  0x1a   :  { %s273_s8 = scalar_lea.vmem %s29_s27, 1024  ;;  %p278_p12 = scmp.lt.s32.totalorder %s29_s27, %s29_s27 }
  0x1b   :  { %p274_p11 = scmp.ne.s32.totalorder %s29_s27, %s273_s8  ;;  %p279_p13 = scmp.lt.s32.totalorder %s273_s8, %s273_s8 }
  0x1d   :  { %p280_p0 = por %p279_p13, %p278_p12 }
  0x1f   :  { %p281_p1 = pnand %p280_p0, %p274_p11 }
  0x21   :  { %284 = shalt.err (!%p281_p1)
}
  0x22   :  { %s317_s0 = smov 256   ;;  %s318_s9 = smov 16  }
  0x23   :  { %34 = dma.hbm_to_vmem [thread:$0]  %s381_s1, 1024, %s29_s27, [#allocation6], %s317_s0, %s317_s0, %s318_s9  }
  0x24   :  { %307 = dma.done.wait [#allocation3], 256  }
  0x25   :  { %308 = vsyncadd [#allocation3], 4294967040 }
  0x26   :  { %309 = dma.done.wait [#allocation6], 1024  }
  0x27   :  { %310 = vsyncadd [#allocation6], 4294966272  ;;  %v319_v0 = vmov 0.0   ;;  %v46_v1 = vld [vmem:[#allocation5 + $0x8] sm:$0xff]  ;;  %v48_v2 = vld [vmem:[#allocation5 + $0x18] sm:$0xff]  ;;  %vm65_vm0 = vcmask 261120   ;;  %v55_v15 = vlaneseq }
  0x28   :  { %136 = vmatprep.mubr.f32.mxu0 %v319_v0  ;;  %142 = vmatprep.mubr.f32.mxu1 %v319_v0  ;;  %v45_v3 = vld [vmem:[#allocation5] sm:$0xff]  ;;  %v205_v4 = vpack.c.bf16 %v48_v2, %v46_v1  ;;  %v47_v5 = vld [vmem:[#allocation5 + $0x10] sm:$0xff]  ;;  %v50_v6 = vld [vmem:[#allocation5 + $0x28] sm:$0xff]  ;;  %vm181_vm1 = vcmask 1041409  }
  0x29   :  { %v52_v7 = vld [vmem:[#allocation5 + $0x38] sm:$0xff]  ;;  %v207_v8 = vpack.c.bf16 %v47_v5, %v45_v3  ;;  %v49_v10 = vld [vmem:[#allocation5 + $0x20] sm:$0xff]  ;;  %v51_v11 = vld [vmem:[#allocation5 + $0x30] sm:$0xff]  ;;  %v56_v16 = vshrl.u32 %v55_v15, 7 }
  0x2a   :  { %v209_v9 = vpack.c.bf16 %v52_v7, %v50_v6  ;;  %206 = vmatprep.subr.bf16.mxu0 %v205_v4  ;;  %213 = vmatprep.subr.bf16.mxu1 %v205_v4  ;;  %v211_v12 = vpack.c.bf16 %v51_v11, %v49_v10  ;;  %v43_v13 = vld [vmem:[#allocation2] sm:$0xff]  ;;  %v44_v14 = vld [vmem:[#allocation2 + $0x8] sm:$0xff] }
  0x2b   :  { %208 = vmatpush1.bf16.msra.mxu0 %v207_v8  ;;  %215 = vmatpush1.bf16.msra.mxu1 %v207_v8  ;;  %v57_v17 = vsub.s32 0, %v56_v16  ;;  %v53_v18 = vld [vmem:[%s382_s2] sm:$0x3]  ;;  %v61_v28 = vsub.s32 1, %v56_v16  ;;  %s320_s2 = smov [#allocation7]  }
  0x2c   :  { %210 = vmatprep.subr.bf16.mxu0 %v209_v9  ;;  %214 = vmatprep.subr.bf16.mxu1 %v209_v9  ;;  %s191_s13 = sshll.u32 %s320_s2, 4  ;;  %s192_s13 = int_to_ptr.vmem [resolvable:$true] %s191_s13 }
  0x2d   :  { %v58_v19 = vrot.slane %v53_v18, %v57_v17  ;;  %v62_v29 = vrot.slane %v53_v18, %v61_v28  ;;  %s285_s14 = scalar_lea.vmem %s192_s13, 32  ;;  %p290_p3 = scmp.lt.s32.totalorder %s192_s13, %s192_s13 }
  0x2e   :  { %p286_p2 = scmp.ne.s32.totalorder %s192_s13, %s285_s14  ;;  %p291_p4 = scmp.lt.s32.totalorder %s285_s14, %s285_s14 }
  0x2f   :  { %212 = vmatpush1.bf16.msra.mxu0 %v211_v12  ;;  %216 = vmatpush1.bf16.msra.mxu1 %v211_v12 }
  0x30   :  { %p292_p5 = por %p291_p4, %p290_p3 }
  0x32   :  { %201 = vmatmul.mubr.msk.f32.vlgmr.msra.gmra.mrb[0].mxu0 %vm65_vm0, %v43_v13  ;;  %202 = vmatmul.mubr.msk.f32.vlgmr.msra.gmra.mrb[0].mxu1 %vm65_vm0, %v44_v14  ;;  %p293_p6 = pnand %p292_p5, %p286_p2 }
 0x105   :  { %v138_v20 = vpop.f32.mrb[0].mxu0  ;;  %v144_v21 = vpop.f32.mrb[0].mxu1 }
 0x106   :  { %v139_v22 = vadd.f32 %v138_v20, %v58_v19  ;;  %v145_v23 = vadd.f32 %v144_v21, %v58_v19  ;;  %v140_v24 = vpop.f32.mrb[1].mxu0  ;;  %v146_v25 = vpop.f32.mrb[1].mxu1 }
 0x107   :  { %v141_v30 = vadd.f32 %v140_v24, %v62_v29  ;;  %v147_v31 = vadd.f32 %v146_v25, %v62_v29 }
 0x108   :  { %v203_v26 = vmul.f32 -1.442695, %v139_v22  ;;  %v204_v27 = vmul.f32 -1.442695, %v145_v23 }
 0x10a   :  { %225 = vpow2.f32 %v203_v26 }
 0x10b   :  { %227 = vpow2.f32 %v204_v27 }
 0x10c   :  { %229 = vtanh.f32 %v141_v30 }
 0x10d   :  { %231 = vtanh.f32 %v147_v31 }
 0x114   :  { %v226_v32 = vpop.eup %225 }
 0x115   :  { %v228_v33 = vpop.eup %227  ;;  %v155_v34 = vadd.f32 1.0, %v226_v32 }
 0x116   :  { %v156_v35 = vadd.f32 1.0, %v228_v33  ;;  %v230_v36 = vpop.eup %229 }
 0x117   :  { %233 = vrcp.f32 %v155_v34  ;;  %v232_v37 = vpop.eup %231 }
 0x118   :  { %235 = vrcp.f32 %v156_v35 }
 0x121   :  { %v234_v38 = vpop.eup %233 }
 0x122   :  { %v236_v39 = vpop.eup %235  ;;  %v163_v40 = vmul.f32 %v234_v38, %v230_v36 }
 0x123   :  { %v164_v41 = vmul.f32 %v236_v39, %v232_v37 }
 0x124   :  { %v165_v42 = vrot.slane %v163_v40, 4 }
 0x125   :  { %v171_v43 = vrot.slane %v164_v41, 4 }
 0x126   :  { %v166_v44 = vadd.f32 %v165_v42, %v163_v40 }
 0x127   :  { %v172_v45 = vadd.f32 %v171_v43, %v164_v41 }
 0x128   :  { %v167_v46 = vrot.slane %v166_v44, 2 }
 0x129   :  { %v173_v47 = vrot.slane %v172_v45, 2 }
 0x12a   :  { %v168_v48 = vadd.f32 %v167_v46, %v166_v44 }
 0x12b   :  { %v174_v49 = vadd.f32 %v173_v47, %v172_v45 }
 0x12c   :  { %v169_v50 = vrot.slane %v168_v48, 1 }
 0x12d   :  { %v175_v51 = vrot.slane %v174_v49, 1 }
 0x12e   :  { %v170_v52 = vadd.f32 %v169_v50, %v168_v48 }
 0x12f   :  { %v176_v53 = vadd.f32 %v175_v51, %v174_v49 }
 0x130   :  { %237 = vtanh.f32 %v170_v52 }
 0x131   :  { %239 = vtanh.f32 %v176_v53 }
 0x13a   :  { %v238_v54 = vpop.eup %237 }
 0x13b   :  { %v240_v55 = vpop.eup %239 }
 0x13c   :  { %v182_v56 = vsel %vm181_vm1, %v240_v55, %v238_v54 }
 0x13d   :  { %184 = vst [vmem:[#allocation7] sm:$0x3] %v182_v56 }
 0x13e   :  { %296 = shalt.err (!%p293_p6)
}
 0x13f   :  { %s297_s17 = scalar_lea.hbm %s383_s3, 32 }
 0x140   :  { %p298_p7 = scmp.ne.s32.totalorder %s383_s3, %s297_s17  ;;  %p301_p8 = scmp.lt.u32.totalorder %s297_s17, %s383_s3 }
 0x142   :  { %p303_p9 = pnand %p301_p8, %p298_p7 }
 0x144   :  { %306 = shalt.err (!%p303_p9)
}
 0x145   :  { %194 = dma.vmem_to_hbm [thread:$0]  %s192_s13, 32, %s383_s3, [#allocation4]  }
 0x146   :  { %311 = dma.done.wait [#allocation4], 32  }
 0x147   :  { %312 = vsyncadd [#allocation4], 4294967264 }
 0x148   :  { %198 = vsyncpa [#allocation3], 1 }
 0x149   :  { %199 = vsyncpa [#allocation6], 1 }
 0x14a   :  { %200 = vsyncpa [#allocation4], 1 }

</bundles_post_ra>
